<compile_context>
chip_gen: v7x
topology: tpu7x:2x2x1
jax: 0.10.0
libtpu: 0.0.40
codegen_flags: <defaults>
</compile_context>

<pallas_src>
import functools

import numpy as np
import jax
import jax.numpy as jnp
from jax.experimental import pallas as pl
from jax.experimental.pallas import tpu as pltpu


def _round_up(x, m):
    return ((x + m - 1) // m) * m


def _rnn_seq_kernel(x_ref, h0_ref, internal_ref, wih_t_ref, whh_t_ref, mu_ref,
                    o_ref, h_scratch, *, sig, hidden_size):
    """One timestep of the LayerNorm RNN cell; grid = (batch_tiles, T)."""
    t = pl.program_id(1)

    # Load the initial hidden state into the carried VMEM scratch at t == 0
    # (also re-runs whenever the batch-tile index changes).
    @pl.when(t == 0)
    def _():
        h_scratch[...] = h0_ref[...]

    # --- two MXU matmuls: bf16 operands, f32 accumulation -------------------
    x_t = x_ref[0]                                     # [TB, I]  bf16
    h = h_scratch[...]                                 # [TB, Hp] f32 (carried)
    z = (jnp.dot(x_t, wih_t_ref[...], preferred_element_type=jnp.float32)
         + jnp.dot(h.astype(jnp.bfloat16), whh_t_ref[...],
                   preferred_element_type=jnp.float32))            # [TB, Hp] f32

    # --- LayerNorm (f32 epilogue) -------------------------------------------
    # Padded hidden lanes of z are exactly zero (padded weight columns are
    # zero), so summing over the padded width and dividing by the real
    # hidden_size is exact.  One-pass var = E[z^2] - mean^2 (two XLU
    # reductions back-to-back, one VPU pass over z).
    inv_h = 1.0 / float(hidden_size)
    mean = jnp.sum(z, axis=-1, keepdims=True) * inv_h
    ez2 = jnp.sum(z * z, axis=-1, keepdims=True) * inv_h
    var = jnp.maximum(ez2 - mean * mean, 0.0)
    sigma = jnp.sqrt(var) + 1e-4                        # std(unbiased=False)+1e-4
    inv_sigma = pl.reciprocal(sigma, approx=True)       # EUP vrcp, ~free slot
    ln = (z - mean) * (inv_sigma * sig) + mu_ref[...]

    # --- residual add + ReLU; write output and carry the state --------------
    hy = jnp.maximum(ln + internal_ref[0], 0.0)         # [TB, Hp] f32
    h_scratch[...] = hy
    o_ref[0] = hy.astype(o_ref.dtype)


def prepare_params(weight_ih, weight_hh, mu):
    """One-time parameter preprocessing (hoisted out of the forward call):
    transpose, zero-pad the hidden axis to a lane multiple of 128, and cast
    the matmul operands to bf16.  `mu` (the LayerNorm shift) stays f32."""
    hidden_size, input_size = weight_ih.shape
    assert weight_hh.shape == (hidden_size, hidden_size)
    hp = _round_up(hidden_size, 128)

    wih_t = jnp.zeros((input_size, hp), jnp.float32)
    wih_t = wih_t.at[:, :hidden_size].set(jnp.asarray(weight_ih, jnp.float32).T)
    whh_t = jnp.zeros((hp, hp), jnp.float32)
    whh_t = whh_t.at[:hidden_size, :hidden_size].set(
        jnp.asarray(weight_hh, jnp.float32).T)
    mu_p = jnp.zeros((1, hp), jnp.float32)
    mu_p = mu_p.at[0, :hidden_size].set(jnp.asarray(mu, jnp.float32).reshape(-1))

    return {
        "wih_t": wih_t.astype(jnp.bfloat16),   # [I,  Hp]
        "whh_t": whh_t.astype(jnp.bfloat16),   # [Hp, Hp]
        "mu": mu_p,                            # [1,  Hp] f32
        "input_size": input_size,
        "hidden_size": hidden_size,
        "hidden_pad": hp,
    }


def layernorm_rnn_sequence(params, x_seq, internal_seq, hx, sig=1.0):
    """Run T fused timesteps of the LayerNorm RNN cell in a single kernel.

    x_seq:        [T, B, input_size]
    internal_seq: [T, B, hidden_size]
    hx:           [B, hidden_size]
    Returns hy_seq [T, B, hidden_size]; the final state is hy_seq[-1].
    """
    T, B, I = x_seq.shape
    H, Hp = params["hidden_size"], params["hidden_pad"]
    assert I == params["input_size"]
    assert internal_seq.shape == (T, B, H)
    assert hx.shape == (B, H)

    # Batch tiling: row tiles (multiple of 8 sublanes) on a "parallel" axis.
    tb = min(_round_up(B, 8), 256)
    bp = _round_up(B, tb)

    # Pad batch rows and hidden lanes with zeros (padded rows/lanes are inert
    # and sliced off below).
    x_p = jnp.zeros((T, bp, I), jnp.bfloat16)
    x_p = x_p.at[:, :B, :].set(jnp.asarray(x_seq).astype(jnp.bfloat16))
    int_p = jnp.zeros((T, bp, Hp), jnp.float32)
    int_p = int_p.at[:, :B, :H].set(jnp.asarray(internal_seq, jnp.float32))
    hx_p = jnp.zeros((bp, Hp), jnp.float32)
    hx_p = hx_p.at[:B, :H].set(jnp.asarray(hx, jnp.float32))

    grid = (bp // tb, T)
    kernel = functools.partial(_rnn_seq_kernel, sig=float(sig), hidden_size=H)

    # VMEM budget: double-buffered activation streams + resident weights +
    # carried-state scratch, with headroom.  Clamped to a range safe on both
    # v5e/v6e (128 MiB physical) and v7x (64 MiB physical).
    # NOTE: for very large H on v7x, tile the contraction (K) dim with a
    # VMEM accumulator instead of keeping the whole W_hh^T resident.
    est = (2 * (tb * I * 2 + 2 * tb * Hp * 4           # x / internal / out
                + tb * Hp * 4                          # h0
                + I * Hp * 2 + Hp * Hp * 2 + Hp * 4)   # weights + mu
           + tb * Hp * 4)                              # scratch
    vmem_limit = int(min(max(2 * est, 32 * 1024 * 1024), 48 * 1024 * 1024))

    hy_p = pl.pallas_call(
        kernel,
        out_shape=jax.ShapeDtypeStruct((T, bp, Hp), jnp.float32),
        grid_spec=pltpu.PrefetchScalarGridSpec(
            num_scalar_prefetch=0,
            grid=grid,
            in_specs=[
                # per-timestep activation streams
                pl.BlockSpec((1, tb, I), lambda b, t: (t, b, 0)),
                # initial hidden state: constant along t (read only at t == 0)
                pl.BlockSpec((tb, Hp), lambda b, t: (b, 0)),
                pl.BlockSpec((1, tb, Hp), lambda b, t: (t, b, 0)),
                # weights + mu: constant index_map -> DMA'd once, VMEM-resident
                pl.BlockSpec((I, Hp), lambda b, t: (0, 0)),
                pl.BlockSpec((Hp, Hp), lambda b, t: (0, 0)),
                pl.BlockSpec((1, Hp), lambda b, t: (0, 0)),
            ],
            out_specs=pl.BlockSpec((1, tb, Hp), lambda b, t: (t, b, 0)),
            scratch_shapes=[pltpu.VMEM((tb, Hp), jnp.float32)],
        ),
        compiler_params=pltpu.CompilerParams(
            dimension_semantics=("parallel", "arbitrary"),
            vmem_limit_bytes=vmem_limit,
        ),
    )(x_p, hx_p, int_p, params["wih_t"], params["whh_t"], params["mu"])

    return hy_p[:, :B, :H]


def layernorm_rnn_cell(params, x, internal, state, sig=1.0):
    """Single-step forward mirroring LayerNormRNNCell.forward(input, internal,
    state) -> (hy, (hy,)).  Runs the same fused kernel with T == 1."""
    hx = state[0]
    hy = layernorm_rnn_sequence(params, x[None], internal[None], hx, sig=sig)[0]
    return hy, (hy,)


def _reference_sequence(x_seq, internal_seq, hx, weight_ih, weight_hh, mu,
                        sig=1.0, matmul_dtype=jnp.float32):
    """Pure-JAX reference.  matmul_dtype=bfloat16 mirrors the kernel's MXU
    operand precision (f32 accumulation); LayerNorm/ReLU are f32."""
    wih_t = jnp.asarray(weight_ih, jnp.float32).T.astype(matmul_dtype)
    whh_t = jnp.asarray(weight_hh, jnp.float32).T.astype(matmul_dtype)
    h = jnp.asarray(hx, jnp.float32)
    outs = []
    for t in range(x_seq.shape[0]):
        z = (jnp.dot(x_seq[t].astype(matmul_dtype), wih_t,
                     preferred_element_type=jnp.float32)
             + jnp.dot(h.astype(matmul_dtype), whh_t,
                       preferred_element_type=jnp.float32))
        mean = z.mean(-1, keepdims=True)
        std = jnp.sqrt(((z - mean) ** 2).mean(-1, keepdims=True)) + 1e-4
        ln = (z - mean) / std * sig + mu
        h = jnp.maximum(ln + internal_seq[t], 0.0)
        outs.append(h)
    return jnp.stack(outs)


if __name__ == "__main__":
    # Small shapes consistent with the module: per step, mm of [B, I] x [I, H].
    B, input_size, hidden_size, T = 8, 16, 32, 8

    key = jax.random.PRNGKey(0)
    k1, k2, k3, k4, k5 = jax.random.split(key, 5)

    # Parameter init matching __init__: U(-rootk, rootk) weights, mu = zeros,
    # sig = 1.0 (scalar).
    rootk_i = np.sqrt(1.0 / input_size)
    rootk_h = np.sqrt(1.0 / hidden_size)
    weight_ih = jax.random.uniform(k1, (hidden_size, input_size),
                                   minval=-rootk_i, maxval=rootk_i,
                                   dtype=jnp.float32)
    weight_hh = jax.random.uniform(k2, (hidden_size, hidden_size),
                                   minval=-rootk_h, maxval=rootk_h,
                                   dtype=jnp.float32)
    mu = jnp.zeros((hidden_size,), jnp.float32)

    x_seq = jax.random.normal(k3, (T, B, input_size), jnp.float32)
    internal_seq = jax.random.normal(k4, (T, B, hidden_size), jnp.float32)
    hx = jax.random.normal(k5, (B, hidden_size), jnp.float32)

    # One-time parameter prep (transpose / pad / bf16 cast hoisted here).
    params = prepare_params(weight_ih, weight_hh, mu)

    # Fused multi-timestep kernel (weights resident across all T steps).
    hy_seq = jax.block_until_ready(
        layernorm_rnn_sequence(params, x_seq, internal_seq, hx))

    # Single-step module-style forward (same kernel, T == 1).
    hy1, (state1,) = layernorm_rnn_cell(params, x_seq[0], internal_seq[0], (hx,))
    hy1 = jax.block_until_ready(hy1)

    # Reference with matching MXU operand precision (bf16 operands, f32
    # accumulation); tolerance covers the EUP approx-reciprocal path (~1e-3).
    ref_seq = _reference_sequence(x_seq, internal_seq, hx,
                                  weight_ih, weight_hh, mu,
                                  matmul_dtype=jnp.bfloat16)
    np.testing.assert_allclose(np.asarray(hy_seq), np.asarray(ref_seq),
                               rtol=2e-2, atol=2e-2)
    np.testing.assert_allclose(np.asarray(hy1), np.asarray(ref_seq[0]),
                               rtol=2e-2, atol=2e-2)

    assert hy_seq.shape == (T, B, hidden_size)
    assert hy1.shape == (B, hidden_size)
    assert np.array_equal(np.asarray(hy1), np.asarray(state1))

    print("KERNEL_OK")
</pallas_src>

<mosaic_0001>
module attributes {stable_mosaic.version = 11 : i64} {
  func.func @_rnn_seq_kernel(%arg0: i32, %arg1: i32, %arg2: memref<1x8x16xbf16, #tpu.memory_space<vmem>>, %arg3: memref<8x128xf32, #tpu.memory_space<vmem>>, %arg4: memref<1x8x128xf32, #tpu.memory_space<vmem>>, %arg5: memref<16x128xbf16, #tpu.memory_space<vmem>>, %arg6: memref<128x128xbf16, #tpu.memory_space<vmem>>, %arg7: memref<1x128xf32, #tpu.memory_space<vmem>>, %arg8: memref<1x8x128xf32, #tpu.memory_space<vmem>>, %arg9: memref<8x128xf32, #tpu.memory_space<vmem>>) attributes {dimension_semantics = [#tpu.dimension_semantics<parallel>, #tpu.dimension_semantics<arbitrary>], iteration_bounds = array<i64: 1, 8>, scalar_prefetch = 0 : i64, scratch_operands = 1 : i64, tpu.core_type = #tpu.core_type<tc>, window_params = [{transform_indices = @transform_0, window_bounds = array<i64: 1, 8, 16>}, {transform_indices = @transform_1, window_bounds = array<i64: 8, 128>}, {transform_indices = @transform_2, window_bounds = array<i64: 1, 8, 128>}, {pipeline_mode = #tpu.pipeline_mode<synchronous>, transform_indices = @transform_3, window_bounds = array<i64: 16, 128>}, {pipeline_mode = #tpu.pipeline_mode<synchronous>, transform_indices = @transform_4, window_bounds = array<i64: 128, 128>}, {pipeline_mode = #tpu.pipeline_mode<synchronous>, transform_indices = @transform_5, window_bounds = array<i64: 1, 128>}, {transform_indices = @transform_6, window_bounds = array<i64: 1, 8, 128>}]} {
    %c0_i32 = arith.constant 0 : i32
    %0 = arith.cmpi eq, %arg1, %c0_i32 : i32
    %1 = arith.extui %0 : i1 to i32
    %c0_i32_0 = arith.constant 0 : i32
    %2 = arith.cmpi ne, %1, %c0_i32_0 : i32
    scf.if %2 {
      %c0_28 = arith.constant 0 : index
      %c0_29 = arith.constant 0 : index
      %47 = vector.load %arg3[%c0_28, %c0_29] : memref<8x128xf32, #tpu.memory_space<vmem>>, vector<8x128xf32>
      %c0_30 = arith.constant 0 : index
      %c0_31 = arith.constant 0 : index
      %48 = vector.load %arg9[%c0_30, %c0_31] : memref<8x128xf32, #tpu.memory_space<vmem>>, vector<8x128xf32>
      tpu.vector_store %arg9[%c0_30, %c0_31], %47 {strides = array<i32>} : memref<8x128xf32, #tpu.memory_space<vmem>>, vector<8x128xf32>,
    } else {
    }
    %c0 = arith.constant 0 : index
    %c0_1 = arith.constant 0 : index
    %c0_2 = arith.constant 0 : index
    %3 = vector.load %arg2[%c0, %c0_1, %c0_2] : memref<1x8x16xbf16, #tpu.memory_space<vmem>>, vector<1x8x16xbf16>
    %4 = vector.shape_cast %3 : vector<1x8x16xbf16> to vector<8x16xbf16>
    %c0_3 = arith.constant 0 : index
    %c0_4 = arith.constant 0 : index
    %5 = vector.load %arg9[%c0_3, %c0_4] : memref<8x128xf32, #tpu.memory_space<vmem>>, vector<8x128xf32>
    %c0_5 = arith.constant 0 : index
    %c0_6 = arith.constant 0 : index
    %6 = vector.load %arg5[%c0_5, %c0_6] : memref<16x128xbf16, #tpu.memory_space<vmem>>, vector<16x128xbf16>
    %cst = arith.constant dense<0.000000e+00> : vector<8x128xf32>
    %7 = tpu.matmul %4, %6, %cst {dimension_numbers = #tpu.dot_dimension_numbers<[1], [0], [0], [1], [0, 0, 1, 1], [], []>} : vector<8x16xbf16>, vector<16x128xbf16>, vector<8x128xf32> -> vector<8x128xf32>
    %8 = arith.truncf %5 : vector<8x128xf32> to vector<8x128xbf16>
    %c0_7 = arith.constant 0 : index
    %c0_8 = arith.constant 0 : index
    %9 = vector.load %arg6[%c0_7, %c0_8] : memref<128x128xbf16, #tpu.memory_space<vmem>>, vector<128x128xbf16>
    %cst_9 = arith.constant dense<0.000000e+00> : vector<8x128xf32>
    %10 = tpu.matmul %8, %9, %cst_9 {dimension_numbers = #tpu.dot_dimension_numbers<[1], [0], [0], [1], [0, 0, 1, 1], [], []>} : vector<8x128xbf16>, vector<128x128xbf16>, vector<8x128xf32> -> vector<8x128xf32>
    %11 = arith.addf %7, %10 : vector<8x128xf32>
    %cst_10 = arith.constant dense<0.000000e+00> : vector<8xf32>
    %12 = vector.multi_reduction <add>, %11, %cst_10 [1] : vector<8x128xf32> to vector<8xf32>
    %13 = vector.shape_cast %12 : vector<8xf32> to vector<8x1xf32>
    %cst_11 = arith.constant 3.125000e-02 : f32
    %14 = vector.broadcast %cst_11 : f32 to vector<8x1xf32>
    %15 = arith.mulf %13, %14 : vector<8x1xf32>
    %16 = arith.mulf %11, %11 : vector<8x128xf32>
    %cst_12 = arith.constant dense<0.000000e+00> : vector<8xf32>
    %17 = vector.multi_reduction <add>, %16, %cst_12 [1] : vector<8x128xf32> to vector<8xf32>
    %18 = vector.shape_cast %17 : vector<8xf32> to vector<8x1xf32>
    %cst_13 = arith.constant 3.125000e-02 : f32
    %19 = vector.broadcast %cst_13 : f32 to vector<8x1xf32>
    %20 = arith.mulf %18, %19 : vector<8x1xf32>
    %21 = arith.mulf %15, %15 : vector<8x1xf32>
    %22 = arith.subf %20, %21 : vector<8x1xf32>
    %cst_14 = arith.constant 0.000000e+00 : f32
    %23 = vector.broadcast %cst_14 : f32 to vector<8x1xf32>
    %24 = arith.maximumf %22, %23 : vector<8x1xf32>
    %25 = math.sqrt %24 : vector<8x1xf32>
    %cst_15 = arith.constant 9.99999974E-5 : f32
    %26 = vector.broadcast %cst_15 : f32 to vector<8x1xf32>
    %27 = arith.addf %25, %26 : vector<8x1xf32>
    %28 = tpu.reciprocal %27 {approx = true} : vector<8x1xf32> -> vector<8x1xf32>
    %29 = vector.broadcast %15 : vector<8x1xf32> to vector<8x128xf32>
    %30 = arith.subf %11, %29 : vector<8x128xf32>
    %cst_16 = arith.constant 1.000000e+00 : f32
    %31 = vector.broadcast %cst_16 : f32 to vector<8x1xf32>
    %32 = arith.mulf %28, %31 : vector<8x1xf32>
    %33 = vector.broadcast %32 : vector<8x1xf32> to vector<8x128xf32>
    %34 = arith.mulf %30, %33 : vector<8x128xf32>
    %c0_17 = arith.constant 0 : index
    %c0_18 = arith.constant 0 : index
    %35 = vector.load %arg7[%c0_17, %c0_18] : memref<1x128xf32, #tpu.memory_space<vmem>>, vector<1x128xf32>
    %36 = vector.broadcast %35 : vector<1x128xf32> to vector<8x128xf32>
    %37 = arith.addf %34, %36 : vector<8x128xf32>
    %c0_19 = arith.constant 0 : index
    %c0_20 = arith.constant 0 : index
    %c0_21 = arith.constant 0 : index
    %38 = vector.load %arg4[%c0_19, %c0_20, %c0_21] : memref<1x8x128xf32, #tpu.memory_space<vmem>>, vector<1x8x128xf32>
    %39 = vector.shape_cast %38 : vector<1x8x128xf32> to vector<8x128xf32>
    %40 = arith.addf %37, %39 : vector<8x128xf32>
    %cst_22 = arith.constant 0.000000e+00 : f32
    %41 = vector.broadcast %cst_22 : f32 to vector<8x128xf32>
    %42 = arith.maximumf %40, %41 : vector<8x128xf32>
    %c0_23 = arith.constant 0 : index
    %c0_24 = arith.constant 0 : index
    %43 = vector.load %arg9[%c0_23, %c0_24] : memref<8x128xf32, #tpu.memory_space<vmem>>, vector<8x128xf32>
    tpu.vector_store %arg9[%c0_23, %c0_24], %42 {strides = array<i32>} : memref<8x128xf32, #tpu.memory_space<vmem>>, vector<8x128xf32>,
    %c0_25 = arith.constant 0 : index
    %c0_26 = arith.constant 0 : index
    %c0_27 = arith.constant 0 : index
    %44 = vector.load %arg8[%c0_25, %c0_26, %c0_27] : memref<1x8x128xf32, #tpu.memory_space<vmem>>, vector<1x8x128xf32>
    %45 = vector.shape_cast %44 : vector<1x8x128xf32> to vector<8x128xf32>
    %46 = vector.shape_cast %42 : vector<8x128xf32> to vector<1x8x128xf32>
    tpu.vector_store %arg8[%c0_25, %c0_26, %c0_27], %46 {strides = array<i32>} : memref<1x8x128xf32, #tpu.memory_space<vmem>>, vector<1x8x128xf32>,
    return
  }
  func.func @transform_0(%arg0: i32, %arg1: i32) -> (i32, i32, i32) {
    %c0_i32 = arith.constant 0 : i32
    %c0_i32_0 = arith.constant 0 : i32
    return %arg1, %arg0, %c0_i32 : i32, i32, i32
  }
  func.func @transform_1(%arg0: i32, %arg1: i32) -> (i32, i32) {
    %c0_i32 = arith.constant 0 : i32
    %c0_i32_0 = arith.constant 0 : i32
    return %arg0, %c0_i32 : i32, i32
  }
  func.func @transform_2(%arg0: i32, %arg1: i32) -> (i32, i32, i32) {
    %c0_i32 = arith.constant 0 : i32
    %c0_i32_0 = arith.constant 0 : i32
    return %arg1, %arg0, %c0_i32 : i32, i32, i32
  }
  func.func @transform_3(%arg0: i32, %arg1: i32) -> (i32, i32) {
    %c0_i32 = arith.constant 0 : i32
    %c0_i32_0 = arith.constant 0 : i32
    %c0_i32_1 = arith.constant 0 : i32
    return %c0_i32, %c0_i32_0 : i32, i32
  }
  func.func @transform_4(%arg0: i32, %arg1: i32) -> (i32, i32) {
    %c0_i32 = arith.constant 0 : i32
    %c0_i32_0 = arith.constant 0 : i32
    %c0_i32_1 = arith.constant 0 : i32
    return %c0_i32, %c0_i32_0 : i32, i32
  }
  func.func @transform_5(%arg0: i32, %arg1: i32) -> (i32, i32) {
    %c0_i32 = arith.constant 0 : i32
    %c0_i32_0 = arith.constant 0 : i32
    %c0_i32_1 = arith.constant 0 : i32
    return %c0_i32, %c0_i32_0 : i32, i32
  }
  func.func @transform_6(%arg0: i32, %arg1: i32) -> (i32, i32, i32) {
    %c0_i32 = arith.constant 0 : i32
    %c0_i32_0 = arith.constant 0 : i32
    return %arg1, %arg0, %c0_i32 : i32, i32, i32
  }
}

</mosaic_0001>

<bundles_post_ra>
// kernel: tpu_custom_call.1
= control target key start
LH: loop header
LB: loop body
LE: loop exit
PB: predicated region body
PF: predicated region fallthrough
CT: control target
= control target key end

     0   :  { %s1418_s0 = inlined_call_operand.hbm [shape: bf16[8,8,16], index: 0, kind: input, shape index: {}]   ;;  %s1419_s1 = inlined_call_operand.hbm [shape: f32[8,128], index: 1, kind: input, shape index: {}]   ;;  %s1420_s2 = inlined_call_operand.hbm [shape: f32[8,8,128], index: 2, kind: input, shape index: {}]   ;;  %s1421_s3 = inlined_call_operand.vmem [shape: bf16[16,128], index: 3, kind: input, shape index: {}]   ;;  %s1422_s4 = inlined_call_operand.hbm [shape: bf16[128,128], index: 4, kind: input, shape index: {}]   ;;  %s1423_s5 = inlined_call_operand.vmem [shape: f32[1,128], index: 5, kind: input, shape index: {}]   ;;  %s1424_s6 = inlined_call_operand.hbm [shape: f32[8,8,128], index: 6, kind: output, shape index: {}]  }
   0x1   :  { %1435 = sst [smem:[#allocation19_spill]] %s1418_s0 }
   0x2   :  { %1436 = sst [smem:[#allocation20_spill]] %s1419_s1 }
   0x3   :  { %11 = vsyncpa [#allocation4], 0 }
   0x4   :  { %13 = vsyncpa [#allocation4 + $0x1], 0 }
   0x5   :  { %14 = vsyncpa [#allocation7], 0 }
   0x6   :  { %15 = vsyncpa [#allocation5], 0 }
   0x7   :  { %17 = vsyncpa [#allocation5 + $0x1], 0  ;;  %s1123_s21 = smov 0   ;;  %s1125_s22 = smov 0  }
   0x8   :  { %s1127_s23 = smov 0   ;;  %s1129_s24 = smov 0  }
   0x9   :  { %s1131_s25 = smov 0   ;;  %s1133_s26 = smov 0  }
   0xa LB: > { %1437 = sst [smem:[#allocation16_spill]] %s1065_s23  ;;  %s1154_s27 = sadd.s32 4294967295, %s1077_s26   ;;  %s1077_s26 = sphi %s1133_s26, %s23_s26   ;;  %s1073_s25 = sphi %s1131_s25, %s1470_s25   ;;  %s1069_s24 = sphi %s1129_s24, %s1469_s24   ;;  %s1065_s23 = sphi %s1127_s23, %s1465_s23   ;;  %s1061_s22 = sphi %s1125_s22, %s1468_s22   ;;  %s1057_s21 = sphi %s1123_s21, %s1467_s21  }
   0xb   : > { %s693_s28 = sadd.s32 4294967294, %s1077_s26   ;;  %p57_p0 = scmp.ne.s32.totalorder %s1061_s22, %s1057_s21 }
   0xc   : > { %p1425_p1 = scmp.eq.s32.totalorder %s1154_s27, 0  ;;  %p206_p3 = scmp.eq.s32.totalorder %s693_s28, 7 }
   0xd   : > { %p694_p5 = scmp.ge.s32.totalorder %s1077_s26, 1  ;;  %p213_p7 = scmp.lt.s32.totalorder %s1077_s26, 9 }
   0xe   : > { %p1163_p4 = por %p1425_p1, %p57_p0  ;;  %p1168_p6 = por %p206_p3, %p57_p0 }
   0xf   : > { %p1173_p8 = pnand %p694_p5, %p213_p7  ;;  %s1079_s8 = smov [#allocation6]  }
  0x10   : > { %s1438_s29 = scalar_select %p1163_p4, 1, 0 }
  0x11   : > { %s1439_s30 = scalar_select %p1168_p6, 1, 0 }
  0x12   : > { %s1440_s7 = scalar_select %p1173_p8, 1, 0 }
  0x13   : > { %s228_s9 = sshll.u32 %s1079_s8, 4  ;;  %p776_p9 = pneg %p1173_p8  ;;  %s229_s9 = int_to_ptr.vmem [resolvable:$true] %s228_s9 }
  0x14   : > { %s32_s11 = sadd.s32 1, %s1073_s25  ;;  %s44_s12 = sadd.s32 1, %s1065_s23 }
  0x15   : > { %p1181_p10 = pnand %p776_p9, %p1425_p1  ;;  %p1187_p11 = scmp.ge.s32.totalorder %s32_s11, 8 }
  0x16   : > { %s1443_s1 = sld [smem:[#allocation20_spill]] }
  0x17   : > { %s1442_s13 = scalar_select %p1187_p11, 1, 0 }
  0x18   : > { %p1429_p13 = pneg %p1181_p10 }
  0x1c   : > { %s867_s16 = scalar_lea.hbm %s1443_s1, 128 }
  0x1d   : > { %p868_p12 = scmp.ne.s32.totalorder %s1443_s1, %s867_s16  ;;  %p874_p5 = scmp.lt.u32.totalorder %s867_s16, %s1443_s1 }
  0x1f   : > { %p870_p0 = pnand %p1429_p13, %p868_p12 }
  0x21   : > { %p871_p3 = pneg %p870_p0 }
  0x23   : > { %p876_p7 = pnand %p874_p5, %p871_p3 }
  0x25   : > { %879 = shalt.err (!%p876_p7)
}
  0x26   : > { %s880_s28 = scalar_lea.vmem %s229_s9, 128  ;;  %p888_p6 = scmp.lt.s32.totalorder %s229_s9, %s229_s9 }
  0x27   : > { %p881_p9 = scmp.ne.s32.totalorder %s229_s9, %s880_s28  ;;  %p889_p4 = scmp.lt.s32.totalorder %s880_s28, %s880_s28 }
  0x29   : > { %p883_p1 = pnand %p881_p9, %p1429_p13  ;;  %p890_p8 = por %p889_p4, %p888_p6 }
  0x2b   : > { %p884_p2 = pneg %p883_p1 }
  0x2d   : > { %p891_p11 = pnand %p890_p8, %p884_p2 }
  0x2f   : > { %894 = shalt.err (!%p891_p11)
}
  0x30   : > { %779 = dma.hbm_to_vmem [thread:$0]  (!%p1181_p10), %s1443_s1, 128, %s229_s9, [#allocation7]  }
  0x31   : > { %p1444_p1 = scmp.ne.s32.totalorder %s1442_s13, 0  ;;  %p51_p2 = scmp.ne.s32.totalorder %s1065_s23, %s1061_s22 }
  0x32   : > { %p52_p4 = scmp.eq.s32.totalorder %s1077_s26, 0  ;;  %p796_p6 = scmp.lt.s32.totalorder %s1077_s26, 8 }
  0x33   : > { %s1472_s11 = smov (%p1444_p1, %s32_s11), 0  ;;  %p1446_p12 = scmp.eq.s32.totalorder %s1154_s27, 7 }
  0x34   : > { %1445 = sst [smem:[#allocation17_spill]] %s1472_s11  ;;  %s39_s15 = ssub.s32 %s1073_s25, %s1472_s11 }
  0x35   : > { %p42_p8 = scmp.eq.s32.totalorder %s39_s15, 0  ;;  %p53_p11 = por %p52_p4, %p51_p2 }
  0x36   : > { %p1225_p0 = por %p1446_p12, %p51_p2  ;;  %s258_s17 = sand.u32 1, %s1077_s26  }
  0x37   : > { %s1233_s18 = scalar_select %p42_p8, %s1065_s23, %s44_s12  }
  0x38   : > { %s1447_s16 = scalar_select %p1225_p0, 1, 0 }
  0x39   : > { %1448 = sst [smem:[#allocation18_spill]] %s1233_s18  ;;  %s260_s9 = sand.u32 1, %s1065_s23  }
  0x3a   : > { %s698_s13 = sshll.u32 %s260_s9, 2  ;;  %s699_s19 = sshll.u32 %s1073_s25, 6 }
  0x3b   : > { %s1449_s0 = sld [smem:[#allocation19_spill]]  ;;  %s262_s14 = scalar_lea.vmem [#allocation3], %s698_s13 }
  0x3c   : > { %s270_s15 = sshll.u32 %s262_s14, 4  ;;  %p1242_p3 = pnand %p796_p6, %p53_p11  ;;  %s1246_s15 = int_to_ptr.vmem [resolvable:$true] %s270_s15 }
  0x3d   : > { %s1248_s12 = sshll.u32 %s260_s9, 3  ;;  %s1250_s11 = scalar_lea.sflag [#allocation4], %s258_s17 }
  0x3e   : > { %s1450_s1 = scalar_select %p1242_p3, 1, 0 }
  0x3f   : > { %p1431_p7 = pneg %p1242_p3 }
  0x41   : > { %s1240_s8 = scalar_lea.hbm %s1449_s0, %s699_s19  ;;  %s900_s28 = scalar_lea.hbm %s1449_s0, 512 }
  0x42   : > { %s895_s19 = scalar_lea.hbm %s1240_s8, 64  ;;  %p901_p2 = scmp.lt.u32.totalorder %s1240_s8, %s1449_s0 }
  0x43   : > { %p896_p5 = scmp.ne.s32.totalorder %s1240_s8, %s895_s19  ;;  %p902_p4 = scmp.lt.u32.totalorder %s900_s28, %s895_s19 }
  0x44   : > { %p904_p8 = scmp.lt.u32.totalorder %s895_s19, %s1240_s8 }
  0x45   : > { %p898_p9 = pnand %p1431_p7, %p896_p5  ;;  %p903_p6 = por %p902_p4, %p901_p2 }
  0x47   : > { %p899_p1 = pneg %p898_p9  ;;  %p905_p11 = por %p904_p8, %p903_p6 }
  0x49   : > { %p906_p12 = pnand %p905_p11, %p899_p1 }
  0x4b   : > { %909 = shalt.err (!%p906_p12)
}
  0x4c   : > { %s910_s17 = scalar_lea.vmem %s1246_s15, 64  ;;  %s1080_s9 = smov [#allocation3]  }
  0x4d   : > { %p911_p5 = scmp.ne.s32.totalorder %s1246_s15, %s910_s17  ;;  %s915_s13 = sshll.u32 %s1080_s9, 4  ;;  %s916_s13 = int_to_ptr.vmem [resolvable:$false] %s915_s13 }
  0x4e   : > { %s917_s18 = scalar_lea.vmem %s916_s13, 128  ;;  %p918_p0 = scmp.lt.s32.totalorder %s1246_s15, %s916_s13 }
  0x4f   : > { %p913_p9 = pnand %p911_p5, %p1431_p7  ;;  %p919_p2 = scmp.lt.s32.totalorder %s917_s18, %s910_s17 }
  0x51   : > { %p914_p13 = pneg %p913_p9  ;;  %p920_p4 = por %p919_p2, %p918_p0 }
  0x53   : > { %p921_p6 = pnand %p920_p4, %p914_p13 }
  0x55   : > { %924 = shalt.err (!%p921_p6)
}
  0x56   : > { %786 = dma.hbm_to_vmem [thread:$0]  (!%p1242_p3), %s1240_s8, 64, %s1246_s15, %s1250_s11  }
  0x57   : > { %s1081_s19 = smov [#allocation9]   ;;  %s925_s9 = scalar_lea.hbm %s1422_s4, 1024 }
  0x58   : > { %s241_s20 = sshll.u32 %s1081_s19, 4  ;;  %p926_p0 = scmp.ne.s32.totalorder %s1422_s4, %s925_s9  ;;  %s242_s20 = int_to_ptr.vmem [resolvable:$true] %s241_s20 }
  0x59   : > { %p1451_p13 = pneg %p1181_p10  ;;  %p932_p11 = scmp.lt.u32.totalorder %s925_s9, %s1422_s4 }
  0x5b   : > { %p928_p1 = pnand %p926_p0, %p1451_p13 }
  0x5d   : > { %p929_p8 = pneg %p928_p1 }
  0x5f   : > { %p934_p12 = pnand %p932_p11, %p929_p8 }
  0x61   : > { %937 = shalt.err (!%p934_p12)
}
  0x62   : > { %s938_s8 = scalar_lea.vmem %s242_s20, 1024  ;;  %p1452_p9 = pmov %p1451_p13 }
  0x63   : > { %p939_p5 = scmp.ne.s32.totalorder %s242_s20, %s938_s8  ;;  %p946_p6 = scmp.lt.s32.totalorder %s242_s20, %s242_s20 }
  0x64   : > { %p947_p7 = scmp.lt.s32.totalorder %s938_s8, %s938_s8 }
  0x65   : > { %p941_p2 = pnand %p939_p5, %p1452_p9 }
  0x66   : > { %p948_p3 = por %p947_p7, %p946_p6 }
  0x67   : > { %p942_p4 = pneg %p941_p2 }
  0x69   : > { %p949_p0 = pnand %p948_p3, %p942_p4 }
  0x6b   : > { %952 = shalt.err (!%p949_p0)
}
  0x6c   : > { %s1082_s0 = smov 64   ;;  %s1083_s15 = smov 4  }
  0x6d   : > { %782 = dma.hbm_to_vmem [thread:$0]  (!%p1181_p10), %s1422_s4, 1024, %s242_s20, [#allocation7], %s1082_s0, %s1082_s0, %s1083_s15  }
  0x6e   : > { %s701_s14 = sshll.u32 %s1073_s25, 7  ;;  %s281_s18 = scalar_lea.vmem [#allocation8], %s1248_s12 }
  0x6f   : > { %s1302_s17 = scalar_lea.hbm %s1420_s2, %s701_s14  ;;  %s289_s8 = sshll.u32 %s281_s18, 4  ;;  %s290_s8 = int_to_ptr.vmem [resolvable:$true] %s289_s8 }
  0x70   : > { %s953_s23 = scalar_lea.hbm %s1302_s17, 128  ;;  %p1453_p7 = scmp.ne.s32.totalorder %s1450_s1, 0 }
  0x71   : > { %p954_p3 = scmp.ne.s32.totalorder %s1302_s17, %s953_s23  ;;  %s958_s0 = scalar_lea.hbm %s1420_s2, 1024 }
  0x72   : > { %p1454_p13 = pneg %p1453_p7  ;;  %p959_p10 = scmp.lt.u32.totalorder %s1302_s17, %s1420_s2 }
  0x73   : > { %p960_p11 = scmp.lt.u32.totalorder %s958_s0, %s953_s23  ;;  %p962_p5 = scmp.lt.u32.totalorder %s953_s23, %s1302_s17 }
  0x74   : > { %p956_p1 = pnand %p954_p3, %p1454_p13 }
  0x75   : > { %p961_p12 = por %p960_p11, %p959_p10 }
  0x76   : > { %p957_p8 = pneg %p956_p1 }
  0x77   : > { %p963_p9 = por %p962_p5, %p961_p12 }
  0x79   : > { %p964_p2 = pnand %p963_p9, %p957_p8 }
  0x7b   : > { %967 = shalt.err (!%p964_p2)
}
  0x7c   : > { %s968_s12 = scalar_lea.vmem %s290_s8, 128  ;;  %p1455_p6 = pmov %p1454_p13 }
  0x7d   : > { %p969_p4 = scmp.ne.s32.totalorder %s290_s8, %s968_s12  ;;  %s1084_s28 = smov [#allocation8]  }
  0x7e   : > { %s973_s14 = sshll.u32 %s1084_s28, 4  ;;  %s974_s14 = int_to_ptr.vmem [resolvable:$false] %s973_s14 }
  0x7f   : > { %p971_p0 = pnand %p969_p4, %p1455_p6  ;;  %s975_s9 = scalar_lea.vmem %s974_s14, 256 }
  0x80   : > { %p976_p13 = scmp.lt.s32.totalorder %s290_s8, %s974_s14  ;;  %p977_p1 = scmp.lt.s32.totalorder %s975_s9, %s968_s12 }
  0x81   : > { %p972_p3 = pneg %p971_p0 }
  0x82   : > { %p978_p10 = por %p977_p1, %p976_p13 }
  0x84   : > { %p979_p11 = pnand %p978_p10, %p972_p3 }
  0x86   : > { %982 = shalt.err (!%p979_p11)
}
  0x87   : > { %789 = dma.hbm_to_vmem [thread:$0]  (!%p1453_p7), %s1302_s17, 128, %s290_s8, %s1250_s11  }
  0x88   : > { %p1456_p8 = scmp.ne.s32.totalorder %s1440_s7, 0 }
  0x89   : > { %s300_s23 = sand.u32 (!%p1456_p8), 1, %s1154_s27   ;;  %s1329_s13 = sand.u32 (!%p1456_p8), 1, %s1061_s22  }
  0x8a   : > { %298 = sbr.rel (%p1456_p8) target bundleno = 613 (0x265), region = 44  ;;  %s703_s18 = sshll.u32 (!%p1456_p8), %s1329_s13, 2 }
  0x8b   : > { %s301_s10 = scalar_lea.sflag (!%p1456_p8), [#allocation4], %s300_s23  ;;  %s1332_s20 = scalar_lea.vmem (!%p1456_p8), [#allocation3], %s703_s18 }
  0x8c   : > { %p1457_p12 = scmp.ne.s32.totalorder (!%p1456_p8), %s1438_s29, 0 }
  0x91   : > { %1036 = dma.done.wait (%p1457_p12), %s301_s10, 64  }
  0x92   : > { %1038 = vsyncadd (%p1457_p12), %s301_s10, 4294967232  ;;  %p1458_p7 = scmp.eq.s32.totalorder %s1154_s27, 0 }
  0x94   : > { %1040 = dma.done.wait (%p1458_p7), [#allocation7], 128   ;;  %p1459_p5 = pmov %p1458_p7 }
  0x95   : > { %s705_s1 = sshll.u32 %s1329_s13, 3 }
  0x96   : > { %1042 = vsyncadd (%p1459_p5), [#allocation7], 4294967168  ;;  %s1343_s7 = scalar_lea.vmem [#allocation8], %s705_s1 }
  0x97   : > { %1044 = dma.done.wait (%p1457_p12), %s301_s10, 128  }
  0x98   : > { %1046 = vsyncadd (%p1457_p12), %s301_s10, 4294967168  ;;  %p1460_p9 = pmov %p1459_p5 }
  0x99   : > { %p1461_p2 = pmov %p1459_p5 }
  0x9a   : > { %1048 = dma.done.wait (%p1460_p9), [#allocation7], 1024  }
  0x9b   : > { %1050 = vsyncadd (%p1461_p2), [#allocation7], 4294966272  ;;  %s1353_s11 = scalar_lea.vmem [#allocation10], %s705_s1  ;;  %p708_p4 = scmp.ne.s32.totalorder %s1069_s24, 0 }
  0x9c   : > { %v360_v0 = vld [vmem:[#allocation6] sm:$0xff] (!%p708_p4) }
  0x9d   : > { %359 = sbr.rel (%p708_p4) target bundleno = 164 (0xa4), region = 64  ;;  %361 = vst [vmem:[#allocation2] sm:$0xff] (!%p708_p4), %v360_v0 }
  0xa4 PF: > { %v854_v1 = vld [vmem:[#allocation9] sm:$0xff]   ;;  %v1085_v2 = vmov 0.0   ;;  %v855_v3 = vld [vmem:[#allocation9 + $0x8] sm:$0xff]   ;;  %vm1086_vm0 = vmmov 0   ;;  %v856_v4 = vld [vmem:[#allocation9 + $0x10] sm:$0xff]   ;;  %vm477_vm1 = vcmask 130048  }
  0xa5   : > { %735 = vmatprep.subr.bf16.mxu1 %v1085_v2  ;;  %755 = vmatprep.subr.bf16.mxu0 %v1085_v2  ;;  %v861_v5 = vld [vmem:[%s1421_s3] sm:$0xff]   ;;  %v362_v6 = vld [vmem:[%s1332_s20] sm:$0xf]  ;;  %v859_v9 = vld [vmem:[#allocation9 + $0x28] sm:$0xff]   ;;  %s721_s0 = sshll.u32 %s1069_s24, 7  ;;  %s570_s15 = sshll.u32 %s1353_s11, 4  ;;  %s1371_s15 = int_to_ptr.vmem [resolvable:$true] %s570_s15 }
  0xa6   : > { %736 = vmatpush3.bf16.msra.mxu1 %v854_v1  ;;  %757 = vmatprep.mubr.msk.bf16.mxu0 %vm1086_vm0, %v1085_v2  ;;  %v857_v7 = vld [vmem:[#allocation9 + $0x18] sm:$0xff]   ;;  %v858_v8 = vld [vmem:[#allocation9 + $0x20] sm:$0xff]   ;;  %v860_v10 = vld [vmem:[#allocation9 + $0x30] sm:$0xff]   ;;  %s1369_s28 = scalar_lea.hbm %s1424_s6, %s721_s0  ;;  %s556_s14 = scalar_lea.sflag [#allocation5], %s1329_s13 }
  0xa7   : > { %737 = vmatprep.subr.bf16.mxu1 %v1085_v2  ;;  %751 = vmatprep.mubr.msk.bf16.mxu1 %vm1086_vm0, %v1085_v2  ;;  %v862_v11 = vld [vmem:[#allocation9 + $0x38] sm:$0xff]   ;;  %s983_s9 = scalar_lea.vmem %s1371_s15, 128  ;;  %p1462_p0 = scmp.ne.s32.totalorder %s1447_s16, 0 }
  0xa8   : > { %756 = vmatpush3.bf16.msra.mxu0 %v861_v5  ;;  %v363_v12 = vld [vmem:[#allocation2] sm:$0xff]  ;;  %p984_p6 = scmp.ne.s32.totalorder %s1371_s15, %s983_s9  ;;  %s1087_s24 = smov [#allocation10]  }
  0xa9   : > { %v366_v13 = vpack.c.bf16 %v363_v12, %v363_v12  ;;  %v719_v39 = vld [vmem:[%s1423_s5] ss:$0 sm:$0xff]  ;;  %s987_s23 = sshll.u32 %s1087_s24, 4  ;;  %s988_s23 = int_to_ptr.vmem [resolvable:$false] %s987_s23 }
  0xaa   : > { %738 = vmatpush3.bf16.msra.mxu1 %v855_v3  ;;  %v550_v41 = vld [vmem:[%s1343_s7] sm:$0xff]  ;;  %p985_p3 = pnand %p984_p6, %p1462_p0  ;;  %s989_s18 = scalar_lea.vmem %s988_s23, 256 }
  0xab   : > { %739 = vmatprep.subr.bf16.mxu1 %v1085_v2  ;;  %758 = vmatmul.mubr.msk.bf16.vlgmr.msra.gmra.mrb[0].mxu0 %vm477_vm1, %v362_v6  ;;  %p990_p1 = scmp.lt.s32.totalorder %s1371_s15, %s988_s23  ;;  %p991_p10 = scmp.lt.s32.totalorder %s989_s18, %s983_s9 }
  0xac   : > { %p986_p13 = pneg %p985_p3 }
  0xad   : > { %p992_p11 = por %p991_p10, %p990_p1 }
  0xae   : > { %740 = vmatpush3.bf16.msra.mxu1 %v856_v4 }
  0xaf   : > { %741 = vmatprep.subr.bf16.mxu1 %v1085_v2  ;;  %p993_p8 = pnand %p992_p11, %p986_p13 }
  0xb2   : > { %742 = vmatpush3.bf16.msra.mxu1 %v857_v7 }
  0xb3   : > { %743 = vmatprep.subr.bf16.mxu1 %v1085_v2 }
  0xb6   : > { %744 = vmatpush3.bf16.msra.mxu1 %v858_v8 }
  0xb7   : > { %745 = vmatprep.subr.bf16.mxu1 %v1085_v2 }
  0xba   : > { %746 = vmatpush3.bf16.msra.mxu1 %v859_v9 }
  0xbb   : > { %747 = vmatprep.subr.bf16.mxu1 %v1085_v2 }
  0xbe   : > { %748 = vmatpush3.bf16.msra.mxu1 %v860_v10 }
  0xbf   : > { %749 = vmatprep.subr.bf16.mxu1 %v1085_v2 }
  0xc2   : > { %750 = vmatpush3.bf16.msra.mxu1 %v862_v11 }
  0xc5   : > { %752 = vmatmul.mubr.bf16.vlgmr.msra.gmra.mrb[0].mxu1 %v366_v13 }
 0x17e   : > { %v515_v14 = vpop.f32.mrb[0].mxu0 }
 0x17f   : > { %v759_v15 = vpop.f32.mrb[1].mxu0 }
 0x180   : > { %v518_v16 = vpop.f32.mrb[2].mxu0 }
 0x181   : > { %v760_v17 = vpop.f32.mrb[3].mxu0 }
 0x198   : > { %v465_v18 = vpop.f32.mrb[0].mxu1 }
 0x199   : > { %v516_v19 = vadd.f32 %v515_v14, %v465_v18  ;;  %v753_v20 = vpop.f32.mrb[1].mxu1 }
 0x19a   : > { %v468_v21 = vpop.f32.mrb[2].mxu1 }
 0x19b   : > { %v754_v22 = vpop.f32.mrb[3].mxu1  ;;  %521 = vadd.xlane.f32.xlu0 %v516_v19  ;;  %v524_v23 = vmul.f32 %v516_v19, %v516_v19 }
 0x19f   : > { %525 = vadd.xlane.f32.xlu0 %v524_v23 }
 0x228   : > { %v522_v24 = vpop.xlane.xlu0 %521 }
 0x229   : > { %v523_v25 = vmul.f32 0.03125, %v522_v24 }
 0x22b   : > { %v528_v27 = vmul.f32 %v523_v25, %v523_v25  ;;  %v540_v37 = vsub.f32 %v516_v19, %v523_v25 }
 0x22c   : > { %v526_v26 = vpop.xlane.xlu0 %525 }
 0x22d   : > { %v527_v28 = vmul.f32 0.03125, %v526_v26 }
 0x22f   : > { %v529_v29 = vsub.f32 %v527_v28, %v528_v27 }
 0x231   : > { %v530_v30 = vmax.f32 %v529_v29, 0.0 }
 0x233   : > { %863 = vrsqrt.f32 %v530_v30  ;;  %vm533_vm2 = vcmp.eq.f32.partialorder %v530_v30, inf  ;;  %v536_v33 = vand.u32 2147483648, %v530_v30  ;;  %vm535_vm3 = vcmp.eq.f32.partialorder %v530_v30, 0.0 }
 0x23d   : > { %v864_v31 = vpop.eup %863 }
 0x23e   : > { %v532_v32 = vmul.f32 %v864_v31, %v530_v30 }
 0x240   : > { %v534_v34 = vsel %vm533_vm2, %v530_v30, %v532_v32 }
 0x241   : > { %v537_v35 = vsel %vm535_vm3, %v536_v33, %v534_v34 }
 0x242   : > { %v538_v36 = vadd.f32 0.0001, %v537_v35 }
 0x244   : > { %865 = vrcp.f32 %v538_v36 }
 0x24e   : > { %v866_v38 = vpop.eup %865 }
 0x24f   : > { %v541_v40 = vmul.f32 %v866_v38, %v540_v37 }
 0x251   : > { %v549_v42 = vadd.f32 %v719_v39, %v541_v40 }
 0x253   : > { %v551_v43 = vadd.f32 %v550_v41, %v549_v42 }
 0x255   : > { %v552_v44 = vmax.f32 %v551_v43, 0.0 }
 0x257   : > { %553 = vst [vmem:[#allocation2] sm:$0xff] %v552_v44  ;;  %554 = vst [vmem:[%s1353_s11] sm:$0xff] %v552_v44 }
 0x258   : > { %996 = shalt.err (!%p993_p8)
}
 0x259   : > { %s997_s13 = scalar_lea.hbm %s1369_s28, 128  ;;  %s1001_s1 = scalar_lea.hbm %s1424_s6, 1024 }
 0x25a   : > { %p998_p12 = scmp.ne.s32.totalorder %s1369_s28, %s997_s13  ;;  %p1002_p9 = scmp.lt.u32.totalorder %s1369_s28, %s1424_s6 }
 0x25b   : > { %p1003_p2 = scmp.lt.u32.totalorder %s1001_s1, %s997_s13  ;;  %p1005_p6 = scmp.lt.u32.totalorder %s997_s13, %s1369_s28 }
 0x25c   : > { %p999_p7 = pnand %p998_p12, %p1462_p0 }
 0x25d   : > { %p1004_p4 = por %p1003_p2, %p1002_p9 }
 0x25e   : > { %p1000_p5 = pneg %p999_p7 }
 0x25f   : > { %p1006_p3 = por %p1005_p6, %p1004_p4 }
 0x261   : > { %p1007_p13 = pnand %p1006_p3, %p1000_p5 }
 0x263   : > { %1010 = shalt.err (!%p1007_p13)
}
 0x264   : > { %774 = dma.vmem_to_hbm [thread:$0]  (%p1462_p0), %s1371_s15, 128, %s1369_s28, %s556_s14  }
 0x265 PF: > { %p799_p1 = scmp.ge.s32.totalorder %s1077_s26, 2  ;;  %s582_s27 = sand.u32 1, %s1057_s21  }
 0x266   : > { %p1463_p10 = scmp.ne.s32.totalorder %s1439_s30, 0  ;;  %s583_s29 = scalar_lea.sflag [#allocation5], %s582_s27 }
 0x268   : > { %p791_p11 = pnand %p799_p1, %p1463_p10 }
 0x26a   : > { %1052 = dma.done.wait (!%p791_p11), %s583_s29, 128  }
 0x26b   : > { %1054 = vsyncadd (!%p791_p11), %s583_s29, 4294967168  ;;  %s23_s26 = sadd.s32 1, %s1077_s26   ;;  %s1464_s17 = sld [smem:[#allocation16_spill]] }
 0x26c   : > { %p20_p8 = scmp.ge.s32.totalorder %s23_s26, 10   ;;  %s1465_s23 = sld [smem:[#allocation18_spill]] }
 0x26d   : > { %s1466_s16 = sld [smem:[#allocation17_spill]]  ;;  %s1467_s21 = smov %s1061_s22 }
 0x26e   : > { %s1469_s24 = smov %s1073_s25  ;;  %22 = sbr.rel (!%p20_p8) target bundleno = 10 (0xa), region = 113 }
 0x271   : > { %s1468_s22 = smov %s1464_s17 }
 0x273   : > { %s1470_s25 = smov %s1466_s16 }
 0x275   :  { %588 = vsyncpa [#allocation4], 1 }
 0x276   :  { %590 = vsyncpa [#allocation4 + $0x1], 1 }
 0x277   :  { %591 = vsyncpa [#allocation7], 1 }
 0x278   :  { %592 = vsyncpa [#allocation5], 1 }
 0x279   :  { %594 = vsyncpa [#allocation5 + $0x1], 1 }

</bundles_post_ra>
